<compile_context>
chip_gen: v7x
topology: tpu7x:2x2x1
jax: 0.10.0
libtpu: 0.0.40
codegen_flags: <defaults>
</compile_context>

<pallas_src>
import functools

import jax
import jax.numpy as jnp
from jax.experimental import pallas as pl
from jax.experimental.pallas import tpu as pltpu


def policy_net_kernel(x_ref, slab_ref, out_ref, *, layout):
    sd = layout["state_dim"]
    hd = layout["hidden_dim"]
    ad = layout["action_dim"]
    r1, r2, r3, rb = layout["r_w1"], layout["r_w2"], layout["r_w3"], layout["r_b"]

    # Static slices into the resident parameter slab (all row offsets are
    # 8-aligned at init time; columns live in the first lane tile).
    w1 = slab_ref[r1:r1 + sd, :hd]
    w2 = slab_ref[r2:r2 + hd, :hd]
    w3 = slab_ref[r3:r3 + hd, :ad]
    b1 = slab_ref[rb:rb + 1, :hd]
    b2 = slab_ref[rb + 1:rb + 2, :hd]
    b3 = slab_ref[rb + 2:rb + 3, :ad]

    # fc1 + relu, fc2 + relu, fc3 — all f32 (kernel is launch/DMA-bound; f32
    # MXU passes are free at these sizes and keep exact parity with PyTorch).
    h = jnp.maximum(
        jnp.dot(x_ref[...], w1, preferred_element_type=jnp.float32) + b1, 0.0)
    h = jnp.maximum(
        jnp.dot(h, w2, preferred_element_type=jnp.float32) + b2, 0.0)
    logits = jnp.dot(h, w3, preferred_element_type=jnp.float32) + b3

    # Numerically stable softmax along dim=1 with EXACT normalization.
    # NOTE: action_dim=4 is lane-sparse (masked stores); if the net ever grows,
    # pad hidden/action dims to multiples of 128 at init time, not here.
    m = jnp.max(logits, axis=-1, keepdims=True)
    e = jnp.exp(logits - m)
    out_ref[...] = (e / jnp.sum(e, axis=-1, keepdims=True)).astype(out_ref.dtype)


def policy_net_forward(x, packed_params, tile_b=8192):
    """x: [batch, state_dim] float32. Returns [batch, action_dim] float32."""
    slab, layout = packed_params
    batch, state_dim = x.shape
    action_dim = layout["action_dim"]

    # Collapse the grid to as few steps as possible (launch-bound kernel):
    # a single full-array block when the batch fits, otherwise 8-row-aligned
    # tiles with Pallas handling the ragged last block (no pad / slice in HBM).
    if batch <= tile_b:
        tb = batch
    else:
        tb = max(8, (tile_b // 8) * 8)
    grid = (pl.cdiv(batch, tb),)

    kernel = functools.partial(policy_net_kernel, layout=layout)

    return pl.pallas_call(
        kernel,
        out_shape=jax.ShapeDtypeStruct((batch, action_dim), jnp.float32),
        grid=grid,
        in_specs=[
            pl.BlockSpec((tb, state_dim), lambda i: (i, 0)),   # streamed x tiles
            pl.BlockSpec(slab.shape, lambda i: (0, 0)),        # VMEM-resident params
        ],
        out_specs=pl.BlockSpec((tb, action_dim), lambda i: (i, 0)),
        compiler_params=pltpu.CompilerParams(
            # Independent batch tiles: lets v7x's dual TensorCores split the
            # grid; harmless on single-TC v5e/v6e (grid is usually 1-2 steps).
            dimension_semantics=("parallel",),
        ),
    )(x, slab)


def init_params(key, state_dim, hidden_dim, action_dim):
    """Deterministic init mimicking PyTorch Linear's U(-1/sqrt(fan_in), +).

    Packs w1/w2/w3/b1/b2/b3 into a single zero-padded f32 slab so the kernel
    takes only two inputs (x + slab)."""
    ks = jax.random.split(key, 6)

    def linear(kw, kb, fan_in, fan_out):
        bound = 1.0 / (fan_in ** 0.5)
        w = jax.random.uniform(kw, (fan_in, fan_out), jnp.float32, -bound, bound)
        b = jax.random.uniform(kb, (fan_out,), jnp.float32, -bound, bound)
        return w, b

    w1, b1 = linear(ks[0], ks[1], state_dim, hidden_dim)
    w2, b2 = linear(ks[2], ks[3], hidden_dim, hidden_dim)
    w3, b3 = linear(ks[4], ks[5], hidden_dim, action_dim)

    def rup8(n):  # keep every section start sublane(8)-aligned
        return -(-n // 8) * 8

    r_w1 = 0
    r_w2 = rup8(r_w1 + state_dim)
    r_w3 = rup8(r_w2 + hidden_dim)
    r_b = rup8(r_w3 + hidden_dim)
    n_rows = rup8(r_b + 3)
    n_cols = max(hidden_dim, action_dim)

    slab = jnp.zeros((n_rows, n_cols), jnp.float32)
    slab = slab.at[r_w1:r_w1 + state_dim, :hidden_dim].set(w1)
    slab = slab.at[r_w2:r_w2 + hidden_dim, :hidden_dim].set(w2)
    slab = slab.at[r_w3:r_w3 + hidden_dim, :action_dim].set(w3)
    slab = slab.at[r_b, :hidden_dim].set(b1)
    slab = slab.at[r_b + 1, :hidden_dim].set(b2)
    slab = slab.at[r_b + 2, :action_dim].set(b3)

    layout = dict(state_dim=state_dim, hidden_dim=hidden_dim,
                  action_dim=action_dim, r_w1=r_w1, r_w2=r_w2, r_w3=r_w3, r_b=r_b)
    packed = (slab, layout)
    f32_params = (w1, b1, w2, b2, w3, b3)
    return packed, f32_params


def reference_forward(x, f32_params):
    w1, b1, w2, b2, w3, b3 = f32_params
    h = jnp.maximum(x @ w1 + b1, 0.0)
    h = jnp.maximum(h @ w2 + b2, 0.0)
    return jax.nn.softmax(h @ w3 + b3, axis=1)


if __name__ == "__main__":
    state_dim, hidden_dim, action_dim = 8, 32, 4

    key = jax.random.PRNGKey(0)
    k_params, k_x, k_x_big = jax.random.split(key, 3)
    packed, f32_params = init_params(k_params, state_dim, hidden_dim, action_dim)

    # Small case: batch=2, single full-array block, grid=(1,).
    x = jax.random.normal(k_x, (2, state_dim), jnp.float32)
    out = jax.block_until_ready(policy_net_forward(x, packed))
    assert out.shape == (2, action_dim)
    assert jnp.allclose(jnp.sum(out, axis=1), 1.0, atol=1e-3)   # exact normalization
    assert jnp.allclose(out, reference_forward(x, f32_params), atol=2e-2)

    # Rollout-style ragged batch: multi-step grid with a partial last block
    # (1030 = 2*512 + 6), handled by Pallas — no wrapper pad or slice.
    x_big = jax.random.normal(k_x_big, (1030, state_dim), jnp.float32)
    out_big = jax.block_until_ready(policy_net_forward(x_big, packed, tile_b=512))
    assert out_big.shape == (1030, action_dim)
    assert jnp.allclose(jnp.sum(out_big, axis=1), 1.0, atol=1e-3)
    assert jnp.allclose(out_big, reference_forward(x_big, f32_params), atol=2e-2)

    print("KERNEL_OK")
</pallas_src>

<mosaic_0001>
module attributes {stable_mosaic.version = 11 : i64} {
  func.func @policy_net_kernel(%arg0: i32, %arg1: memref<2x8xf32, #tpu.memory_space<vmem>>, %arg2: memref<80x32xf32, #tpu.memory_space<vmem>>, %arg3: memref<2x4xf32, #tpu.memory_space<vmem>>) attributes {dimension_semantics = [#tpu.dimension_semantics<parallel>], iteration_bounds = array<i64: 1>, scalar_prefetch = 0 : i64, scratch_operands = 0 : i64, tpu.core_type = #tpu.core_type<tc>, window_params = [{transform_indices = @transform_0, window_bounds = array<i64: 2, 8>}, {pipeline_mode = #tpu.pipeline_mode<synchronous>, transform_indices = @transform_1, window_bounds = array<i64: 80, 32>}, {transform_indices = @transform_2, window_bounds = array<i64: 2, 4>}]} {
    %c0 = arith.constant 0 : index
    %c0_0 = arith.constant 0 : index
    %0 = vector.load %arg2[%c0, %c0_0] : memref<80x32xf32, #tpu.memory_space<vmem>>, vector<8x32xf32>
    %c8 = arith.constant 8 : index
    %c0_1 = arith.constant 0 : index
    %1 = vector.load %arg2[%c8, %c0_1] : memref<80x32xf32, #tpu.memory_space<vmem>>, vector<32x32xf32>
    %c40 = arith.constant 40 : index
    %c0_2 = arith.constant 0 : index
    %2 = vector.load %arg2[%c40, %c0_2] : memref<80x32xf32, #tpu.memory_space<vmem>>, vector<32x4xf32>
    %c72 = arith.constant 72 : index
    %c0_3 = arith.constant 0 : index
    %3 = vector.load %arg2[%c72, %c0_3] : memref<80x32xf32, #tpu.memory_space<vmem>>, vector<1x32xf32>
    %c73 = arith.constant 73 : index
    %c0_4 = arith.constant 0 : index
    %4 = vector.load %arg2[%c73, %c0_4] : memref<80x32xf32, #tpu.memory_space<vmem>>, vector<1x32xf32>
    %c74 = arith.constant 74 : index
    %c0_5 = arith.constant 0 : index
    %5 = vector.load %arg2[%c74, %c0_5] : memref<80x32xf32, #tpu.memory_space<vmem>>, vector<1x4xf32>
    %c0_6 = arith.constant 0 : index
    %c0_7 = arith.constant 0 : index
    %6 = vector.load %arg1[%c0_6, %c0_7] : memref<2x8xf32, #tpu.memory_space<vmem>>, vector<2x8xf32>
    %cst = arith.constant dense<0.000000e+00> : vector<2x32xf32>
    %7 = tpu.matmul %6, %0, %cst {dimension_numbers = #tpu.dot_dimension_numbers<[1], [0], [0], [1], [0, 0, 1, 1], [], []>} : vector<2x8xf32>, vector<8x32xf32>, vector<2x32xf32> -> vector<2x32xf32>
    %8 = vector.broadcast %3 : vector<1x32xf32> to vector<2x32xf32>
    %9 = arith.addf %7, %8 : vector<2x32xf32>
    %cst_8 = arith.constant 0.000000e+00 : f32
    %10 = vector.broadcast %cst_8 : f32 to vector<2x32xf32>
    %11 = arith.maximumf %9, %10 : vector<2x32xf32>
    %cst_9 = arith.constant dense<0.000000e+00> : vector<2x32xf32>
    %12 = tpu.matmul %11, %1, %cst_9 {dimension_numbers = #tpu.dot_dimension_numbers<[1], [0], [0], [1], [0, 0, 1, 1], [], []>} : vector<2x32xf32>, vector<32x32xf32>, vector<2x32xf32> -> vector<2x32xf32>
    %13 = vector.broadcast %4 : vector<1x32xf32> to vector<2x32xf32>
    %14 = arith.addf %12, %13 : vector<2x32xf32>
    %cst_10 = arith.constant 0.000000e+00 : f32
    %15 = vector.broadcast %cst_10 : f32 to vector<2x32xf32>
    %16 = arith.maximumf %14, %15 : vector<2x32xf32>
    %cst_11 = arith.constant dense<0.000000e+00> : vector<2x4xf32>
    %17 = tpu.matmul %16, %2, %cst_11 {dimension_numbers = #tpu.dot_dimension_numbers<[1], [0], [0], [1], [0, 0, 1, 1], [], []>} : vector<2x32xf32>, vector<32x4xf32>, vector<2x4xf32> -> vector<2x4xf32>
    %18 = vector.broadcast %5 : vector<1x4xf32> to vector<2x4xf32>
    %19 = arith.addf %17, %18 : vector<2x4xf32>
    %cst_12 = arith.constant dense<0xFF800000> : vector<2xf32>
    %20 = vector.multi_reduction <maximumf>, %19, %cst_12 [1] : vector<2x4xf32> to vector<2xf32>
    %21 = vector.shape_cast %20 : vector<2xf32> to vector<2x1xf32>
    %22 = vector.broadcast %21 : vector<2x1xf32> to vector<2x4xf32>
    %23 = arith.subf %19, %22 : vector<2x4xf32>
    %24 = math.exp %23 : vector<2x4xf32>
    %cst_13 = arith.constant dense<0.000000e+00> : vector<2xf32>
    %25 = vector.multi_reduction <add>, %24, %cst_13 [1] : vector<2x4xf32> to vector<2xf32>
    %26 = vector.shape_cast %25 : vector<2xf32> to vector<2x1xf32>
    %27 = vector.broadcast %26 : vector<2x1xf32> to vector<2x4xf32>
    %28 = arith.divf %24, %27 : vector<2x4xf32>
    %c0_14 = arith.constant 0 : index
    %c0_15 = arith.constant 0 : index
    %29 = vector.load %arg3[%c0_14, %c0_15] : memref<2x4xf32, #tpu.memory_space<vmem>>, vector<2x4xf32>
    tpu.vector_store %arg3[%c0_14, %c0_15], %28 {strides = array<i32>} : memref<2x4xf32, #tpu.memory_space<vmem>>, vector<2x4xf32>,
    return
  }
  func.func @transform_0(%arg0: i32) -> (i32, i32) {
    %c0_i32 = arith.constant 0 : i32
    %c0_i32_0 = arith.constant 0 : i32
    return %arg0, %c0_i32 : i32, i32
  }
  func.func @transform_1(%arg0: i32) -> (i32, i32) {
    %c0_i32 = arith.constant 0 : i32
    %c0_i32_0 = arith.constant 0 : i32
    %c0_i32_1 = arith.constant 0 : i32
    return %c0_i32, %c0_i32_0 : i32, i32
  }
  func.func @transform_2(%arg0: i32) -> (i32, i32) {
    %c0_i32 = arith.constant 0 : i32
    %c0_i32_0 = arith.constant 0 : i32
    return %arg0, %c0_i32 : i32, i32
  }
}

</mosaic_0001>

<bundles_post_ra>
// kernel: tpu_custom_call.1
= control target key start
LH: loop header
LB: loop body
LE: loop exit
PB: predicated region body
PF: predicated region fallthrough
CT: control target
= control target key end

     0   :  { %vm29_vm0 = vcmask 64512   ;;  %v376_v2 = vmov 0.0   ;;  %vm377_vm1 = vmmov 0   ;;  %v378_v5 = vmov 0.0|0.0   ;;  %s449_s0 = inlined_call_operand.vmem [shape: f32[2,8], index: 0, kind: input, shape index: {}]   ;;  %s450_s1 = inlined_call_operand.vmem [shape: f32[80,32], index: 1, kind: input, shape index: {}]   ;;  %s451_s2 = inlined_call_operand.hbm [shape: f32[2,4], index: 2, kind: output, shape index: {}]  }
   0x1   :  { %v12_v0 = vld [vmem:[%s450_s1] sm:$0xff]  ;;  %305 = vmatprep.subr.mxu0 %v376_v2  ;;  %307 = vmatprep.mubr.msk.f32.mxu0 %vm377_vm1, %v376_v2  ;;  %v13_v3 = vld [vmem:[%s450_s1 + $0x8] sm:$0xff]  ;;  %v14_v4 = vld [vmem:[%s450_s1 + $0x10] sm:$0xff] }
   0x2   :  { %v24_v1 = vld [vmem:[%s449_s0] sm:$0x3]  ;;  %306 = vmatpush3.msra.mxu0 %v12_v0  ;;  %332 = vmatprep.subr.bf16.mxu1 %v378_v5  ;;  %v333_v6 = vpack.c.bf16 %v14_v4, %v13_v3 }
   0x3   :  { %7 = vsyncpa [#allocation3], 0  ;;  %308 = vmatmul.mubr.msk.f32.vlgmr.msra.gmra.mrb[0].mxu0 %vm29_vm0, %v24_v1  ;;  %318 = vmatprep.mubr.msk.f32.mxu1 %vm377_vm1, %v376_v2  ;;  %v15_v7 = vld [vmem:[%s450_s1 + $0x18] sm:$0xff]  ;;  %v16_v8 = vld [vmem:[%s450_s1 + $0x20] sm:$0xff]  ;;  %vm108_vm2 = vcmask 261120   ;;  %vm260_vm3 = vcmask 25600  }
   0x4   :  { %334 = vmatpush3.bf16.msra.mxu1 %v333_v6  ;;  %338 = vmatprep.subr.bf16.mxu0 %v378_v5  ;;  %v336_v9 = vpack.c.bf16 %v16_v8, %v15_v7  ;;  %v17_v10 = vld [vmem:[%s450_s1 + $0x28] sm:$0xff]  ;;  %v18_v11 = vld [vmem:[%s450_s1 + $0x30] sm:$0xff]  ;;  %v19_v18 = vld [vmem:[%s450_s1 + $0x38] sm:$0xff]  ;;  %s379_s6 = smov [#allocation2]  }
   0x5   :  { %335 = vmatprep.subr.bf16.mxu1 %v378_v5  ;;  %329 = vmatprep.mubr.msk.f32.mxu0 %vm377_vm1, %v376_v2  ;;  %v339_v12 = vpack.c.bf16 %v18_v11, %v17_v10  ;;  %v287_v13 = vld [vmem:[%s450_s1 + $0x48] ss:$0 sm:$0xff]  ;;  %v20_v19 = vld [vmem:[%s450_s1 + $0x40] sm:$0xff]  ;;  %v289_v21 = vld [vmem:[%s450_s1 + $0x49] ss:$0 sm:$0xff]  ;;  %s279_s7 = sshll.u32 %s379_s6, 4  ;;  %s280_s7 = int_to_ptr.vmem [resolvable:$true] %s279_s7 }
   0x6   :  { %v342_v20 = vpack.c.bf16 %v20_v19, %v19_v18  ;;  %v291_v26 = vld [vmem:[%s450_s1 + $0x4a] ss:$0 sm:$0xff]  ;;  %s352_s1 = scalar_lea.vmem %s280_s7, 32  ;;  %p357_p1 = scmp.lt.s32.totalorder %s280_s7, %s280_s7 }
   0x7   :  { %340 = vmatpush3.bf16.msra.mxu0 %v339_v12  ;;  %p353_p0 = scmp.ne.s32.totalorder %s280_s7, %s352_s1  ;;  %p358_p2 = scmp.lt.s32.totalorder %s352_s1, %s352_s1 }
   0x8   :  { %337 = vmatpush3.bf16.msra.mxu1 %v336_v9  ;;  %341 = vmatprep.subr.bf16.mxu0 %v378_v5 }
   0x9   :  { %p359_p3 = por %p358_p2, %p357_p1 }
   0xb   :  { %343 = vmatpush3.bf16.msra.mxu0 %v342_v20  ;;  %p360_p4 = pnand %p359_p3, %p353_p0 }
  0xd6   :  { %v99_v14 = vpop.f32.mrb[0].mxu0 }
  0xd7   :  { %v100_v15 = vadd.f32 %v287_v13, %v99_v14  ;;  %v309_v16 = vpop.f32.mrb[1].mxu0 }
  0xd9   :  { %v103_v17 = vmax.f32 %v100_v15, 0.0 }
  0xdb   :  { %319 = vmatmul.mubr.msk.f32.vlgmr.msra.gmra.mrb[0].mxu1 %vm108_vm2, %v103_v17 }
 0x1ae   :  { %v178_v22 = vpop.f32.mrb[0].mxu1 }
 0x1af   :  { %v179_v23 = vadd.f32 %v289_v21, %v178_v22  ;;  %v320_v24 = vpop.f32.mrb[1].mxu1 }
 0x1b1   :  { %v182_v25 = vmax.f32 %v179_v23, 0.0 }
 0x1b3   :  { %330 = vmatmul.mubr.msk.f32.vlgmr.msra.gmra.mrb[2].mxu0 %vm108_vm2, %v182_v25 }
 0x286   :  { %v256_v27 = vpop.f32.mrb[2].mxu0 }
 0x287   :  { %v257_v28 = vadd.f32 %v291_v26, %v256_v27  ;;  %v331_v29 = vpop.f32.mrb[3].mxu0 }
 0x289   :  { %v261_v30 = vsel %vm260_vm3, %v257_v28, -inf }
 0x28a   :  { %262 = vmax.xlane.f32.xlu0 %v261_v30 }
 0x317   :  { %v263_v31 = vpop.xlane.xlu0 %262 }
 0x318   :  { %v264_v32 = vsub.f32 %v257_v28, %v263_v31 }
 0x31a   :  { %v265_v33 = vmul.f32 1.442695, %v264_v32 }
 0x31c   :  { %348 = vpow2.f32 %v265_v33 }
 0x326   :  { %v349_v34 = vpop.eup %348 }
 0x327   :  { %v267_v35 = vsel %vm260_vm3, %v349_v34, 0.0 }
 0x328   :  { %268 = vadd.xlane.f32.xlu0 %v267_v35 }
 0x3b5   :  { %v269_v36 = vpop.xlane.xlu0 %268 }
 0x3b6   :  { %350 = vrcp.f32 %v269_v36 }
 0x3c0   :  { %v351_v37 = vpop.eup %350 }
 0x3c1   :  { %v271_v38 = vmul.f32 %v351_v37, %v349_v34 }
 0x3c3   :  { %272 = vst.msk [vmem:[#allocation2] sm:$0x3] %vm260_vm3, %v271_v38 }
 0x3c4   :  { %363 = shalt.err (!%p360_p4)
}
 0x3c5   :  { %s364_s10 = scalar_lea.hbm %s451_s2, 32 }
 0x3c6   :  { %p365_p5 = scmp.ne.s32.totalorder %s451_s2, %s364_s10  ;;  %p368_p6 = scmp.lt.u32.totalorder %s364_s10, %s451_s2 }
 0x3c8   :  { %p370_p7 = pnand %p368_p6, %p365_p5 }
 0x3ca   :  { %373 = shalt.err (!%p370_p7)
}
 0x3cb   :  { %282 = dma.vmem_to_hbm [thread:$0]  %s280_s7, 32, %s451_s2, [#allocation3]  }
 0x3cc   :  { %374 = dma.done.wait [#allocation3], 32  }
 0x3cd   :  { %375 = vsyncadd [#allocation3], 4294967264 }
 0x3ce   :  { %286 = vsyncpa [#allocation3], 1 }

</bundles_post_ra>
